<compile_context>
chip_gen: v5e
topology: v5e:2x2
jax: 0.10.0
libtpu: 0.0.40
codegen_flags: <defaults>
</compile_context>

<pallas_src>
import jax
import jax.numpy as jnp
from jax.experimental import pallas as pl
from jax.experimental.pallas import tpu as pltpu

ALPHA, BETA, GAMMA, SMOOTH = 0.7, 0.3, 4.0 / 3.0, 1.0
LANE = 128          # lane width
TR_MAX = 1024       # max sublane-rows per tile -> up to 128K pixels / step


def split_mask(mask):
    # mask: (N, 4, H, W). Synthetic stand-in for NeoPolyp's split_mask:
    # channels 0..2 -> neo_mask (one-hot classes), channel 3 -> ignore_mask.
    neo_mask = mask[:, 0:3]
    polyp_mask = jnp.stack([mask[:, 0] + mask[:, 1], mask[:, 2]], axis=1)
    ignore_mask = mask[:, 3:4]
    return polyp_mask, neo_mask, ignore_mask


def _make_loss_kernel(C, TR, HW, ragged):
    """Kernel over blocks x:(1,C,TR,128) logits, m:(1,C+1,TR,128) mask."""

    def kernel(x_ref, m_ref, ce_ref, tp_ref, sp_ref, st_ref):
        i = pl.program_id(1)  # pixel-tile index within this image

        # per-image accumulators live in the resident output blocks
        @pl.when(i == 0)
        def _():
            ce_ref[...] = jnp.zeros_like(ce_ref)
            tp_ref[...] = jnp.zeros_like(tp_ref)
            sp_ref[...] = jnp.zeros_like(sp_ref)
            st_ref[...] = jnp.zeros_like(st_ref)

        # per-class planes, pixels dense on (sublane, lane)
        xs = [x_ref[0, c] for c in range(C)]        # logits   (TR, 128) each
        ts = [m_ref[0, c] for c in range(C)]        # targets  (TR, 128) each
        ig = m_ref[0, C]                            # ignore   (TR, 128)
        w = 1.0 - ig                                # valid weight

        if ragged:
            # mask out pixels past H*W (pad / out-of-bounds tail of last tile)
            row = jax.lax.broadcasted_iota(jnp.int32, (TR, LANE), 0)
            lane = jax.lax.broadcasted_iota(jnp.int32, (TR, LANE), 1)
            pix = (i * TR + row) * LANE + lane
            valid = pix < HW
            zero = jnp.zeros((TR, LANE), jnp.float32)
            w = jnp.where(valid, w, zero)
            xs = [jnp.where(valid, x, zero) for x in xs]
            ts = [jnp.where(valid, t, zero) for t in ts]

        # numerically-stable softmax over the (unrolled) class axis
        xmax = xs[0]
        for x in xs[1:]:
            xmax = jnp.maximum(xmax, x)
        es = [jnp.exp(x - xmax) for x in xs]        # EUP
        denom = es[0]
        for e in es[1:]:
            denom = denom + e
        inv = pl.reciprocal(denom, approx=True)     # EUP, not a VALU divide
        ps = [e * inv for e in es]                  # softmax probs

        # cross entropy with one-hot targets: logsumexp(x) - sum_c t_c * x_c
        # (matches F.cross_entropy(y, argmax(t)) when t is strictly one-hot)
        txs = ts[0] * xs[0]
        for t, x in zip(ts[1:], xs[1:]):
            txs = txs + t * x
        ce = (xmax + jnp.log(denom)) - txs
        ce_ref[0] += jnp.sum(ce * w, axis=0, keepdims=True)          # (1,128)

        # Tversky statistics per class, masked by (1 - ignore)
        for c in range(C):
            pw = ps[c] * w
            tw = ts[c] * w
            tp_ref[0, c:c + 1, :] += jnp.sum(pw * ts[c], axis=0, keepdims=True)
            sp_ref[0, c:c + 1, :] += jnp.sum(pw, axis=0, keepdims=True)
            st_ref[0, c:c + 1, :] += jnp.sum(tw, axis=0, keepdims=True)

    return kernel


@jax.jit
def unet_loss(y_pr, mask):
    # y_pr: (N, 3, H, W) logits, mask: (N, 4, H, W) [3 one-hot classes, ignore]
    N, C, H, W = y_pr.shape
    MC = mask.shape[1]          # C + 1 (neo classes + ignore channel)
    HW = H * W
    P = N * HW

    y_pr = y_pr.astype(jnp.float32)
    mask = mask.astype(jnp.float32)

    # free reshapes: NCHW -> (N, C, HW) -> (N, C, R, 128); pad pixel axis only
    # if HW is not a lane multiple (padded pixels are masked in-kernel).
    R = pl.cdiv(HW, LANE)
    HW_pad = R * LANE
    x = y_pr.reshape(N, C, HW)
    m = mask.reshape(N, MC, HW)
    if HW_pad != HW:
        x = jnp.pad(x, ((0, 0), (0, 0), (0, HW_pad - HW)))
        m = jnp.pad(m, ((0, 0), (0, 0), (0, HW_pad - HW)))
    x = x.reshape(N, C, R, LANE)
    m = m.reshape(N, MC, R, LANE)

    TR = R if R <= TR_MAX else TR_MAX           # satisfies (8,128)/full-dim rule
    n_rb = pl.cdiv(R, TR)
    ragged = (n_rb * TR * LANE != HW)           # tail pixels need masking

    kernel = _make_loss_kernel(C, TR, HW, ragged)

    ce_p, tp_p, sp_p, st_p = pl.pallas_call(
        kernel,
        out_shape=(
            jax.ShapeDtypeStruct((N, 1, LANE), jnp.float32),   # CE lane partials
            jax.ShapeDtypeStruct((N, C, LANE), jnp.float32),   # sum p*t*w
            jax.ShapeDtypeStruct((N, C, LANE), jnp.float32),   # sum p*w
            jax.ShapeDtypeStruct((N, C, LANE), jnp.float32),   # sum t*w
        ),
        grid_spec=pltpu.PrefetchScalarGridSpec(
            num_scalar_prefetch=0,
            grid=(N, n_rb),
            in_specs=[
                pl.BlockSpec((1, C, TR, LANE), lambda n, i: (n, 0, i, 0)),
                pl.BlockSpec((1, MC, TR, LANE), lambda n, i: (n, 0, i, 0)),
            ],
            out_specs=[
                pl.BlockSpec((1, 1, LANE), lambda n, i: (n, 0, 0)),
                pl.BlockSpec((1, C, LANE), lambda n, i: (n, 0, 0)),
                pl.BlockSpec((1, C, LANE), lambda n, i: (n, 0, 0)),
                pl.BlockSpec((1, C, LANE), lambda n, i: (n, 0, 0)),
            ],
        ),
        compiler_params=pltpu.CompilerParams(
            # batch axis parallel -> both v7x TensorCores get disjoint images;
            # pixel axis is the accumulation axis -> arbitrary.
            dimension_semantics=("parallel", "arbitrary"),
        ),
    )(x, m)

    # tiny final combine (glue JAX)
    ce_loss = jnp.sum(ce_p) / P                     # mean over all N*H*W pixels
    tp = jnp.sum(tp_p, axis=(0, 2))
    sp = jnp.sum(sp_p, axis=(0, 2))
    st = jnp.sum(st_p, axis=(0, 2))
    fp = sp - tp
    fn = st - tp
    ft_score = (tp + SMOOTH) / (tp + ALPHA * fp + BETA * fn + SMOOTH)
    ft_loss = jnp.mean((1.0 - ft_score) ** GAMMA)
    return ce_loss + ft_loss


def _reference_loss(y_pr, mask):
    # pure-JAX reference mirroring the PyTorch code
    _, neo, ig = split_mask(mask)
    labels = jnp.argmax(neo, axis=1)
    log_p = jax.nn.log_softmax(y_pr, axis=1)
    ce = -jnp.take_along_axis(log_p, labels[:, None], axis=1)[:, 0]
    w = 1.0 - ig[:, 0]
    ce_loss = jnp.mean(ce * w)

    p = jax.nn.softmax(y_pr, axis=1)
    wfull = 1.0 - ig
    tp = jnp.sum(p * neo * wfull, axis=(0, 2, 3))
    fp = jnp.sum(p * wfull, axis=(0, 2, 3)) - tp
    fn = jnp.sum(neo * wfull, axis=(0, 2, 3)) - tp
    score = (tp + SMOOTH) / (tp + ALPHA * fp + BETA * fn + SMOOTH)
    ft_loss = jnp.mean((1.0 - score) ** GAMMA)
    return ce_loss + ft_loss


if __name__ == "__main__":
    N, C, H, W = 2, 3, 16, 16
    key = jax.random.PRNGKey(0)
    k1, k2, k3 = jax.random.split(key, 3)

    y_pr = jax.random.normal(k1, (N, C, H, W), dtype=jnp.float32)
    labels = jax.random.randint(k2, (N, H, W), 0, C)
    neo = jax.nn.one_hot(labels, C, axis=1, dtype=jnp.float32)          # (N,3,H,W)
    ignore = (jax.random.uniform(k3, (N, 1, H, W)) < 0.1).astype(jnp.float32)
    mask = jnp.concatenate([neo, ignore], axis=1)                       # (N,4,H,W)

    loss = unet_loss(y_pr, mask)
    jax.block_until_ready(loss)

    ref = _reference_loss(y_pr, mask)
    # tolerance covers the EUP approximate reciprocal used for softmax probs
    assert abs(float(loss) - float(ref)) < 2e-3, (float(loss), float(ref))
    print("KERNEL_OK")
</pallas_src>

<mosaic_0001>
module attributes {stable_mosaic.version = 11 : i64} {
  func.func @kernel(%arg0: i32, %arg1: i32, %arg2: memref<1x3x2x128xf32, #tpu.memory_space<vmem>>, %arg3: memref<1x4x2x128xf32, #tpu.memory_space<vmem>>, %arg4: memref<1x1x128xf32, #tpu.memory_space<vmem>>, %arg5: memref<1x3x128xf32, #tpu.memory_space<vmem>>, %arg6: memref<1x3x128xf32, #tpu.memory_space<vmem>>, %arg7: memref<1x3x128xf32, #tpu.memory_space<vmem>>) attributes {dimension_semantics = [#tpu.dimension_semantics<parallel>, #tpu.dimension_semantics<arbitrary>], iteration_bounds = array<i64: 2, 1>, scalar_prefetch = 0 : i64, scratch_operands = 0 : i64, tpu.core_type = #tpu.core_type<tc>, window_params = [{transform_indices = @transform_0, window_bounds = array<i64: 1, 3, 2, 128>}, {transform_indices = @transform_1, window_bounds = array<i64: 1, 4, 2, 128>}, {transform_indices = @transform_2, window_bounds = array<i64: 1, 1, 128>}, {transform_indices = @transform_3, window_bounds = array<i64: 1, 3, 128>}, {transform_indices = @transform_4, window_bounds = array<i64: 1, 3, 128>}, {transform_indices = @transform_5, window_bounds = array<i64: 1, 3, 128>}]} {
    %c0_i32 = arith.constant 0 : i32
    %0 = arith.cmpi eq, %arg1, %c0_i32 : i32
    %1 = arith.extui %0 : i1 to i32
    %c0_i32_0 = arith.constant 0 : i32
    %2 = arith.cmpi ne, %1, %c0_i32_0 : i32
    scf.if %2 {
      %cst_95 = arith.constant 0.000000e+00 : f32
      %131 = vector.broadcast %cst_95 : f32 to vector<1x1x128xf32>
      %c0_96 = arith.constant 0 : index
      %c0_97 = arith.constant 0 : index
      %c0_98 = arith.constant 0 : index
      %132 = vector.load %arg4[%c0_96, %c0_97, %c0_98] : memref<1x1x128xf32, #tpu.memory_space<vmem>>, vector<1x1x128xf32>
      tpu.vector_store %arg4[%c0_96, %c0_97, %c0_98], %131 {strides = array<i32>} : memref<1x1x128xf32, #tpu.memory_space<vmem>>, vector<1x1x128xf32>,
      %cst_99 = arith.constant 0.000000e+00 : f32
      %133 = vector.broadcast %cst_99 : f32 to vector<1x3x128xf32>
      %c0_100 = arith.constant 0 : index
      %c0_101 = arith.constant 0 : index
      %c0_102 = arith.constant 0 : index
      %134 = vector.load %arg5[%c0_100, %c0_101, %c0_102] : memref<1x3x128xf32, #tpu.memory_space<vmem>>, vector<1x3x128xf32>
      tpu.vector_store %arg5[%c0_100, %c0_101, %c0_102], %133 {strides = array<i32>} : memref<1x3x128xf32, #tpu.memory_space<vmem>>, vector<1x3x128xf32>,
      %cst_103 = arith.constant 0.000000e+00 : f32
      %135 = vector.broadcast %cst_103 : f32 to vector<1x3x128xf32>
      %c0_104 = arith.constant 0 : index
      %c0_105 = arith.constant 0 : index
      %c0_106 = arith.constant 0 : index
      %136 = vector.load %arg6[%c0_104, %c0_105, %c0_106] : memref<1x3x128xf32, #tpu.memory_space<vmem>>, vector<1x3x128xf32>
      tpu.vector_store %arg6[%c0_104, %c0_105, %c0_106], %135 {strides = array<i32>} : memref<1x3x128xf32, #tpu.memory_space<vmem>>, vector<1x3x128xf32>,
      %cst_107 = arith.constant 0.000000e+00 : f32
      %137 = vector.broadcast %cst_107 : f32 to vector<1x3x128xf32>
      %c0_108 = arith.constant 0 : index
      %c0_109 = arith.constant 0 : index
      %c0_110 = arith.constant 0 : index
      %138 = vector.load %arg7[%c0_108, %c0_109, %c0_110] : memref<1x3x128xf32, #tpu.memory_space<vmem>>, vector<1x3x128xf32>
      tpu.vector_store %arg7[%c0_108, %c0_109, %c0_110], %137 {strides = array<i32>} : memref<1x3x128xf32, #tpu.memory_space<vmem>>, vector<1x3x128xf32>,
    } else {
    }
    %c0 = arith.constant 0 : index
    %c0_1 = arith.constant 0 : index
    %c0_2 = arith.constant 0 : index
    %c0_3 = arith.constant 0 : index
    %3 = vector.load %arg2[%c0, %c0_1, %c0_2, %c0_3] : memref<1x3x2x128xf32, #tpu.memory_space<vmem>>, vector<1x1x2x128xf32>
    %4 = vector.shape_cast %3 : vector<1x1x2x128xf32> to vector<2x128xf32>
    %c0_4 = arith.constant 0 : index
    %c1 = arith.constant 1 : index
    %c0_5 = arith.constant 0 : index
    %c0_6 = arith.constant 0 : index
    %5 = vector.load %arg2[%c0_4, %c1, %c0_5, %c0_6] : memref<1x3x2x128xf32, #tpu.memory_space<vmem>>, vector<1x1x2x128xf32>
    %6 = vector.shape_cast %5 : vector<1x1x2x128xf32> to vector<2x128xf32>
    %c0_7 = arith.constant 0 : index
    %c2 = arith.constant 2 : index
    %c0_8 = arith.constant 0 : index
    %c0_9 = arith.constant 0 : index
    %7 = vector.load %arg2[%c0_7, %c2, %c0_8, %c0_9] : memref<1x3x2x128xf32, #tpu.memory_space<vmem>>, vector<1x1x2x128xf32>
    %8 = vector.shape_cast %7 : vector<1x1x2x128xf32> to vector<2x128xf32>
    %c0_10 = arith.constant 0 : index
    %c0_11 = arith.constant 0 : index
    %c0_12 = arith.constant 0 : index
    %c0_13 = arith.constant 0 : index
    %9 = vector.load %arg3[%c0_10, %c0_11, %c0_12, %c0_13] : memref<1x4x2x128xf32, #tpu.memory_space<vmem>>, vector<1x1x2x128xf32>
    %10 = vector.shape_cast %9 : vector<1x1x2x128xf32> to vector<2x128xf32>
    %c0_14 = arith.constant 0 : index
    %c1_15 = arith.constant 1 : index
    %c0_16 = arith.constant 0 : index
    %c0_17 = arith.constant 0 : index
    %11 = vector.load %arg3[%c0_14, %c1_15, %c0_16, %c0_17] : memref<1x4x2x128xf32, #tpu.memory_space<vmem>>, vector<1x1x2x128xf32>
    %12 = vector.shape_cast %11 : vector<1x1x2x128xf32> to vector<2x128xf32>
    %c0_18 = arith.constant 0 : index
    %c2_19 = arith.constant 2 : index
    %c0_20 = arith.constant 0 : index
    %c0_21 = arith.constant 0 : index
    %13 = vector.load %arg3[%c0_18, %c2_19, %c0_20, %c0_21] : memref<1x4x2x128xf32, #tpu.memory_space<vmem>>, vector<1x1x2x128xf32>
    %14 = vector.shape_cast %13 : vector<1x1x2x128xf32> to vector<2x128xf32>
    %c0_22 = arith.constant 0 : index
    %c3 = arith.constant 3 : index
    %c0_23 = arith.constant 0 : index
    %c0_24 = arith.constant 0 : index
    %15 = vector.load %arg3[%c0_22, %c3, %c0_23, %c0_24] : memref<1x4x2x128xf32, #tpu.memory_space<vmem>>, vector<1x1x2x128xf32>
    %16 = vector.shape_cast %15 : vector<1x1x2x128xf32> to vector<2x128xf32>
    %cst = arith.constant 1.000000e+00 : f32
    %17 = vector.broadcast %cst : f32 to vector<2x128xf32>
    %18 = arith.subf %17, %16 : vector<2x128xf32>
    %19 = arith.maximumf %4, %6 : vector<2x128xf32>
    %20 = arith.maximumf %19, %8 : vector<2x128xf32>
    %21 = arith.subf %4, %20 : vector<2x128xf32>
    %22 = math.exp %21 : vector<2x128xf32>
    %23 = arith.subf %6, %20 : vector<2x128xf32>
    %24 = math.exp %23 : vector<2x128xf32>
    %25 = arith.subf %8, %20 : vector<2x128xf32>
    %26 = math.exp %25 : vector<2x128xf32>
    %27 = arith.addf %22, %24 : vector<2x128xf32>
    %28 = arith.addf %27, %26 : vector<2x128xf32>
    %29 = tpu.reciprocal %28 {approx = true} : vector<2x128xf32> -> vector<2x128xf32>
    %30 = arith.mulf %22, %29 : vector<2x128xf32>
    %31 = arith.mulf %24, %29 : vector<2x128xf32>
    %32 = arith.mulf %26, %29 : vector<2x128xf32>
    %33 = arith.mulf %10, %4 : vector<2x128xf32>
    %34 = arith.mulf %12, %6 : vector<2x128xf32>
    %35 = arith.addf %33, %34 : vector<2x128xf32>
    %36 = arith.mulf %14, %8 : vector<2x128xf32>
    %37 = arith.addf %35, %36 : vector<2x128xf32>
    %38 = math.log %28 : vector<2x128xf32>
    %39 = arith.addf %20, %38 : vector<2x128xf32>
    %40 = arith.subf %39, %37 : vector<2x128xf32>
    %c0_25 = arith.constant 0 : index
    %c0_26 = arith.constant 0 : index
    %c0_27 = arith.constant 0 : index
    %41 = vector.load %arg4[%c0_25, %c0_26, %c0_27] : memref<1x1x128xf32, #tpu.memory_space<vmem>>, vector<1x1x128xf32>
    %42 = vector.shape_cast %41 : vector<1x1x128xf32> to vector<1x128xf32>
    %43 = arith.mulf %40, %18 : vector<2x128xf32>
    %cst_28 = arith.constant dense<0.000000e+00> : vector<128xf32>
    %44 = vector.multi_reduction <add>, %43, %cst_28 [0] : vector<2x128xf32> to vector<128xf32>
    %45 = vector.shape_cast %44 : vector<128xf32> to vector<1x128xf32>
    %46 = arith.addf %42, %45 : vector<1x128xf32>
    %c0_29 = arith.constant 0 : index
    %c0_30 = arith.constant 0 : index
    %c0_31 = arith.constant 0 : index
    %47 = vector.load %arg4[%c0_29, %c0_30, %c0_31] : memref<1x1x128xf32, #tpu.memory_space<vmem>>, vector<1x1x128xf32>
    %48 = vector.shape_cast %47 : vector<1x1x128xf32> to vector<1x128xf32>
    %49 = vector.shape_cast %46 : vector<1x128xf32> to vector<1x1x128xf32>
    tpu.vector_store %arg4[%c0_29, %c0_30, %c0_31], %49 {strides = array<i32>} : memref<1x1x128xf32, #tpu.memory_space<vmem>>, vector<1x1x128xf32>,
    %50 = arith.mulf %30, %18 : vector<2x128xf32>
    %51 = arith.mulf %10, %18 : vector<2x128xf32>
    %c0_32 = arith.constant 0 : index
    %c0_33 = arith.constant 0 : index
    %c0_34 = arith.constant 0 : index
    %52 = vector.load %arg5[%c0_32, %c0_33, %c0_34] : memref<1x3x128xf32, #tpu.memory_space<vmem>>, vector<1x1x128xf32>
    %53 = vector.shape_cast %52 : vector<1x1x128xf32> to vector<1x128xf32>
    %54 = arith.mulf %50, %10 : vector<2x128xf32>
    %cst_35 = arith.constant dense<0.000000e+00> : vector<128xf32>
    %55 = vector.multi_reduction <add>, %54, %cst_35 [0] : vector<2x128xf32> to vector<128xf32>
    %56 = vector.shape_cast %55 : vector<128xf32> to vector<1x128xf32>
    %57 = arith.addf %53, %56 : vector<1x128xf32>
    %c0_36 = arith.constant 0 : index
    %c0_37 = arith.constant 0 : index
    %c0_38 = arith.constant 0 : index
    %58 = vector.load %arg5[%c0_36, %c0_37, %c0_38] : memref<1x3x128xf32, #tpu.memory_space<vmem>>, vector<1x1x128xf32>
    %59 = vector.shape_cast %58 : vector<1x1x128xf32> to vector<1x128xf32>
    %60 = vector.shape_cast %57 : vector<1x128xf32> to vector<1x1x128xf32>
    tpu.vector_store %arg5[%c0_36, %c0_37, %c0_38], %60 {strides = array<i32>} : memref<1x3x128xf32, #tpu.memory_space<vmem>>, vector<1x1x128xf32>,
    %c0_39 = arith.constant 0 : index
    %c0_40 = arith.constant 0 : index
    %c0_41 = arith.constant 0 : index
    %61 = vector.load %arg6[%c0_39, %c0_40, %c0_41] : memref<1x3x128xf32, #tpu.memory_space<vmem>>, vector<1x1x128xf32>
    %62 = vector.shape_cast %61 : vector<1x1x128xf32> to vector<1x128xf32>
    %cst_42 = arith.constant dense<0.000000e+00> : vector<128xf32>
    %63 = vector.multi_reduction <add>, %50, %cst_42 [0] : vector<2x128xf32> to vector<128xf32>
    %64 = vector.shape_cast %63 : vector<128xf32> to vector<1x128xf32>
    %65 = arith.addf %62, %64 : vector<1x128xf32>
    %c0_43 = arith.constant 0 : index
    %c0_44 = arith.constant 0 : index
    %c0_45 = arith.constant 0 : index
    %66 = vector.load %arg6[%c0_43, %c0_44, %c0_45] : memref<1x3x128xf32, #tpu.memory_space<vmem>>, vector<1x1x128xf32>
    %67 = vector.shape_cast %66 : vector<1x1x128xf32> to vector<1x128xf32>
    %68 = vector.shape_cast %65 : vector<1x128xf32> to vector<1x1x128xf32>
    tpu.vector_store %arg6[%c0_43, %c0_44, %c0_45], %68 {strides = array<i32>} : memref<1x3x128xf32, #tpu.memory_space<vmem>>, vector<1x1x128xf32>,
    %c0_46 = arith.constant 0 : index
    %c0_47 = arith.constant 0 : index
    %c0_48 = arith.constant 0 : index
    %69 = vector.load %arg7[%c0_46, %c0_47, %c0_48] : memref<1x3x128xf32, #tpu.memory_space<vmem>>, vector<1x1x128xf32>
    %70 = vector.shape_cast %69 : vector<1x1x128xf32> to vector<1x128xf32>
    %cst_49 = arith.constant dense<0.000000e+00> : vector<128xf32>
    %71 = vector.multi_reduction <add>, %51, %cst_49 [0] : vector<2x128xf32> to vector<128xf32>
    %72 = vector.shape_cast %71 : vector<128xf32> to vector<1x128xf32>
    %73 = arith.addf %70, %72 : vector<1x128xf32>
    %c0_50 = arith.constant 0 : index
    %c0_51 = arith.constant 0 : index
    %c0_52 = arith.constant 0 : index
    %74 = vector.load %arg7[%c0_50, %c0_51, %c0_52] : memref<1x3x128xf32, #tpu.memory_space<vmem>>, vector<1x1x128xf32>
    %75 = vector.shape_cast %74 : vector<1x1x128xf32> to vector<1x128xf32>
    %76 = vector.shape_cast %73 : vector<1x128xf32> to vector<1x1x128xf32>
    tpu.vector_store %arg7[%c0_50, %c0_51, %c0_52], %76 {strides = array<i32>} : memref<1x3x128xf32, #tpu.memory_space<vmem>>, vector<1x1x128xf32>,
    %77 = arith.mulf %31, %18 : vector<2x128xf32>
    %78 = arith.mulf %12, %18 : vector<2x128xf32>
    %c0_53 = arith.constant 0 : index
    %c1_54 = arith.constant 1 : index
    %c0_55 = arith.constant 0 : index
    %79 = vector.load %arg5[%c0_53, %c1_54, %c0_55] : memref<1x3x128xf32, #tpu.memory_space<vmem>>, vector<1x1x128xf32>
    %80 = vector.shape_cast %79 : vector<1x1x128xf32> to vector<1x128xf32>
    %81 = arith.mulf %77, %12 : vector<2x128xf32>
    %cst_56 = arith.constant dense<0.000000e+00> : vector<128xf32>
    %82 = vector.multi_reduction <add>, %81, %cst_56 [0] : vector<2x128xf32> to vector<128xf32>
    %83 = vector.shape_cast %82 : vector<128xf32> to vector<1x128xf32>
    %84 = arith.addf %80, %83 : vector<1x128xf32>
    %c0_57 = arith.constant 0 : index
    %c1_58 = arith.constant 1 : index
    %c0_59 = arith.constant 0 : index
    %85 = vector.load %arg5[%c0_57, %c1_58, %c0_59] : memref<1x3x128xf32, #tpu.memory_space<vmem>>, vector<1x1x128xf32>
    %86 = vector.shape_cast %85 : vector<1x1x128xf32> to vector<1x128xf32>
    %87 = vector.shape_cast %84 : vector<1x128xf32> to vector<1x1x128xf32>
    tpu.vector_store %arg5[%c0_57, %c1_58, %c0_59], %87 {strides = array<i32>} : memref<1x3x128xf32, #tpu.memory_space<vmem>>, vector<1x1x128xf32>,
    %c0_60 = arith.constant 0 : index
    %c1_61 = arith.constant 1 : index
    %c0_62 = arith.constant 0 : index
    %88 = vector.load %arg6[%c0_60, %c1_61, %c0_62] : memref<1x3x128xf32, #tpu.memory_space<vmem>>, vector<1x1x128xf32>
    %89 = vector.shape_cast %88 : vector<1x1x128xf32> to vector<1x128xf32>
    %cst_63 = arith.constant dense<0.000000e+00> : vector<128xf32>
    %90 = vector.multi_reduction <add>, %77, %cst_63 [0] : vector<2x128xf32> to vector<128xf32>
    %91 = vector.shape_cast %90 : vector<128xf32> to vector<1x128xf32>
    %92 = arith.addf %89, %91 : vector<1x128xf32>
    %c0_64 = arith.constant 0 : index
    %c1_65 = arith.constant 1 : index
    %c0_66 = arith.constant 0 : index
    %93 = vector.load %arg6[%c0_64, %c1_65, %c0_66] : memref<1x3x128xf32, #tpu.memory_space<vmem>>, vector<1x1x128xf32>
    %94 = vector.shape_cast %93 : vector<1x1x128xf32> to vector<1x128xf32>
    %95 = vector.shape_cast %92 : vector<1x128xf32> to vector<1x1x128xf32>
    tpu.vector_store %arg6[%c0_64, %c1_65, %c0_66], %95 {strides = array<i32>} : memref<1x3x128xf32, #tpu.memory_space<vmem>>, vector<1x1x128xf32>,
    %c0_67 = arith.constant 0 : index
    %c1_68 = arith.constant 1 : index
    %c0_69 = arith.constant 0 : index
    %96 = vector.load %arg7[%c0_67, %c1_68, %c0_69] : memref<1x3x128xf32, #tpu.memory_space<vmem>>, vector<1x1x128xf32>
    %97 = vector.shape_cast %96 : vector<1x1x128xf32> to vector<1x128xf32>
    %cst_70 = arith.constant dense<0.000000e+00> : vector<128xf32>
    %98 = vector.multi_reduction <add>, %78, %cst_70 [0] : vector<2x128xf32> to vector<128xf32>
    %99 = vector.shape_cast %98 : vector<128xf32> to vector<1x128xf32>
    %100 = arith.addf %97, %99 : vector<1x128xf32>
    %c0_71 = arith.constant 0 : index
    %c1_72 = arith.constant 1 : index
    %c0_73 = arith.constant 0 : index
    %101 = vector.load %arg7[%c0_71, %c1_72, %c0_73] : memref<1x3x128xf32, #tpu.memory_space<vmem>>, vector<1x1x128xf32>
    %102 = vector.shape_cast %101 : vector<1x1x128xf32> to vector<1x128xf32>
    %103 = vector.shape_cast %100 : vector<1x128xf32> to vector<1x1x128xf32>
    tpu.vector_store %arg7[%c0_71, %c1_72, %c0_73], %103 {strides = array<i32>} : memref<1x3x128xf32, #tpu.memory_space<vmem>>, vector<1x1x128xf32>,
    %104 = arith.mulf %32, %18 : vector<2x128xf32>
    %105 = arith.mulf %14, %18 : vector<2x128xf32>
    %c0_74 = arith.constant 0 : index
    %c2_75 = arith.constant 2 : index
    %c0_76 = arith.constant 0 : index
    %106 = vector.load %arg5[%c0_74, %c2_75, %c0_76] : memref<1x3x128xf32, #tpu.memory_space<vmem>>, vector<1x1x128xf32>
    %107 = vector.shape_cast %106 : vector<1x1x128xf32> to vector<1x128xf32>
    %108 = arith.mulf %104, %14 : vector<2x128xf32>
    %cst_77 = arith.constant dense<0.000000e+00> : vector<128xf32>
    %109 = vector.multi_reduction <add>, %108, %cst_77 [0] : vector<2x128xf32> to vector<128xf32>
    %110 = vector.shape_cast %109 : vector<128xf32> to vector<1x128xf32>
    %111 = arith.addf %107, %110 : vector<1x128xf32>
    %c0_78 = arith.constant 0 : index
    %c2_79 = arith.constant 2 : index
    %c0_80 = arith.constant 0 : index
    %112 = vector.load %arg5[%c0_78, %c2_79, %c0_80] : memref<1x3x128xf32, #tpu.memory_space<vmem>>, vector<1x1x128xf32>
    %113 = vector.shape_cast %112 : vector<1x1x128xf32> to vector<1x128xf32>
    %114 = vector.shape_cast %111 : vector<1x128xf32> to vector<1x1x128xf32>
    tpu.vector_store %arg5[%c0_78, %c2_79, %c0_80], %114 {strides = array<i32>} : memref<1x3x128xf32, #tpu.memory_space<vmem>>, vector<1x1x128xf32>,
    %c0_81 = arith.constant 0 : index
    %c2_82 = arith.constant 2 : index
    %c0_83 = arith.constant 0 : index
    %115 = vector.load %arg6[%c0_81, %c2_82, %c0_83] : memref<1x3x128xf32, #tpu.memory_space<vmem>>, vector<1x1x128xf32>
    %116 = vector.shape_cast %115 : vector<1x1x128xf32> to vector<1x128xf32>
    %cst_84 = arith.constant dense<0.000000e+00> : vector<128xf32>
    %117 = vector.multi_reduction <add>, %104, %cst_84 [0] : vector<2x128xf32> to vector<128xf32>
    %118 = vector.shape_cast %117 : vector<128xf32> to vector<1x128xf32>
    %119 = arith.addf %116, %118 : vector<1x128xf32>
    %c0_85 = arith.constant 0 : index
    %c2_86 = arith.constant 2 : index
    %c0_87 = arith.constant 0 : index
    %120 = vector.load %arg6[%c0_85, %c2_86, %c0_87] : memref<1x3x128xf32, #tpu.memory_space<vmem>>, vector<1x1x128xf32>
    %121 = vector.shape_cast %120 : vector<1x1x128xf32> to vector<1x128xf32>
    %122 = vector.shape_cast %119 : vector<1x128xf32> to vector<1x1x128xf32>
    tpu.vector_store %arg6[%c0_85, %c2_86, %c0_87], %122 {strides = array<i32>} : memref<1x3x128xf32, #tpu.memory_space<vmem>>, vector<1x1x128xf32>,
    %c0_88 = arith.constant 0 : index
    %c2_89 = arith.constant 2 : index
    %c0_90 = arith.constant 0 : index
    %123 = vector.load %arg7[%c0_88, %c2_89, %c0_90] : memref<1x3x128xf32, #tpu.memory_space<vmem>>, vector<1x1x128xf32>
    %124 = vector.shape_cast %123 : vector<1x1x128xf32> to vector<1x128xf32>
    %cst_91 = arith.constant dense<0.000000e+00> : vector<128xf32>
    %125 = vector.multi_reduction <add>, %105, %cst_91 [0] : vector<2x128xf32> to vector<128xf32>
    %126 = vector.shape_cast %125 : vector<128xf32> to vector<1x128xf32>
    %127 = arith.addf %124, %126 : vector<1x128xf32>
    %c0_92 = arith.constant 0 : index
    %c2_93 = arith.constant 2 : index
    %c0_94 = arith.constant 0 : index
    %128 = vector.load %arg7[%c0_92, %c2_93, %c0_94] : memref<1x3x128xf32, #tpu.memory_space<vmem>>, vector<1x1x128xf32>
    %129 = vector.shape_cast %128 : vector<1x1x128xf32> to vector<1x128xf32>
    %130 = vector.shape_cast %127 : vector<1x128xf32> to vector<1x1x128xf32>
    tpu.vector_store %arg7[%c0_92, %c2_93, %c0_94], %130 {strides = array<i32>} : memref<1x3x128xf32, #tpu.memory_space<vmem>>, vector<1x1x128xf32>,
    return
  }
  func.func @transform_0(%arg0: i32, %arg1: i32) -> (i32, i32, i32, i32) {
    %c0_i32 = arith.constant 0 : i32
    %c0_i32_0 = arith.constant 0 : i32
    %c0_i32_1 = arith.constant 0 : i32
    return %arg0, %c0_i32, %arg1, %c0_i32_0 : i32, i32, i32, i32
  }
  func.func @transform_1(%arg0: i32, %arg1: i32) -> (i32, i32, i32, i32) {
    %c0_i32 = arith.constant 0 : i32
    %c0_i32_0 = arith.constant 0 : i32
    %c0_i32_1 = arith.constant 0 : i32
    return %arg0, %c0_i32, %arg1, %c0_i32_0 : i32, i32, i32, i32
  }
  func.func @transform_2(%arg0: i32, %arg1: i32) -> (i32, i32, i32) {
    %c0_i32 = arith.constant 0 : i32
    %c0_i32_0 = arith.constant 0 : i32
    %c0_i32_1 = arith.constant 0 : i32
    return %arg0, %c0_i32, %c0_i32_0 : i32, i32, i32
  }
  func.func @transform_3(%arg0: i32, %arg1: i32) -> (i32, i32, i32) {
    %c0_i32 = arith.constant 0 : i32
    %c0_i32_0 = arith.constant 0 : i32
    %c0_i32_1 = arith.constant 0 : i32
    return %arg0, %c0_i32, %c0_i32_0 : i32, i32, i32
  }
  func.func @transform_4(%arg0: i32, %arg1: i32) -> (i32, i32, i32) {
    %c0_i32 = arith.constant 0 : i32
    %c0_i32_0 = arith.constant 0 : i32
    %c0_i32_1 = arith.constant 0 : i32
    return %arg0, %c0_i32, %c0_i32_0 : i32, i32, i32
  }
  func.func @transform_5(%arg0: i32, %arg1: i32) -> (i32, i32, i32) {
    %c0_i32 = arith.constant 0 : i32
    %c0_i32_0 = arith.constant 0 : i32
    %c0_i32_1 = arith.constant 0 : i32
    return %arg0, %c0_i32, %c0_i32_0 : i32, i32, i32
  }
}

</mosaic_0001>

<bundles_post_ra>
// kernel: unet_loss.1
= control target key start
LH: loop header
LB: loop body
LE: loop exit
PB: predicated region body
PF: predicated region fallthrough
CT: control target
= control target key end

     0   :  { %s746_s18 = smov 0   ;;  %s748_s19 = smov 0   ;;  %s868_s0 = inlined_call_operand.vmem [shape: f32[2,3,2,128], index: 0, kind: input, shape index: {}]   ;;  %s869_s1 = inlined_call_operand.vmem [shape: f32[2,4,2,128], index: 1, kind: input, shape index: {}]   ;;  %s870_s2 = inlined_call_operand.vmem [shape: f32[2,1,128], index: 2, kind: output, shape index: {0}]   ;;  %s871_s3 = inlined_call_operand.vmem [shape: f32[2,3,128], index: 3, kind: output, shape index: {1}]   ;;  %s872_s4 = inlined_call_operand.vmem [shape: f32[2,3,128], index: 4, kind: output, shape index: {2}]   ;;  %s873_s5 = inlined_call_operand.vmem [shape: f32[2,3,128], index: 5, kind: output, shape index: {3}]  }
   0x1   :  { %s750_s20 = smov 0  }
   0x2 LB: > { %s28_s21 = sadd.s32 1, %s709_s19  ;;  %p640_p0 = scmp.ge.s32.totalorder %s713_s20, 1  ;;  %s713_s20 = sphi %s750_s20, %s16_s20   ;;  %s709_s19 = sphi %s748_s19, %s875_s19   ;;  %s705_s18 = sphi %s746_s18, %s874_s18  }
   0x3   : > { %p30_p1 = scmp.ge.s32.totalorder %s28_s21, 2  ;;  %p226_p2 = scmp.lt.s32.totalorder %s713_s20, 3 }
   0x5   : > { %s877_s21 = smov (%p30_p1, %s28_s21), 0  ;;  %p227_p3 = pnand %p640_p0, %p226_p2 }
   0x6   : > { %p275_p4 = scmp.lt.s32.totalorder (!%p227_p3), %s705_s18, 1 }
   0x7   : > { %230 = sbr.rel (%p227_p3) target bundleno = 70 (0x46), region = 28 }
   0xc   : > { %s879_s18 = smov (!%p275_p4, %s705_s18), 1  ;;  %v715_v0 = vmov 0.0   ;;  %vm355_vm0 = vcmask 1041408  }
   0xd   : > { %s655_s22 = smul.u32 6, %s879_s18  ;;  %s654_s23 = sshll.u32 %s879_s18, 3 }
   0xe   : > { %s290_s26 = scalar_lea.vmem %s869_s1, %s654_s23  ;;  %s770_s29 = scalar_lea.vmem %s870_s2, %s879_s18 }
   0xf   : > { %s282_s7 = scalar_lea.vmem %s868_s0, %s655_s22  ;;  %310 = vst [vmem:[%s770_s29] sm:$0x1] %v715_v0  ;;  %s644_s8 = sshll.u32 %s879_s18, 2  ;;  %v651_v4 = vld [vmem:[%s290_s26 + $0x6] sm:$0x3]  ;;  %v794_v6 = vld [vmem:[%s290_s26] sm:$0x3] }
  0x10   : > { %v314_v1 = vld [vmem:[%s282_s7] sm:$0x3]  ;;  %v647_v2 = vld [vmem:[%s282_s7 + $0x2] sm:$0x3]  ;;  %v776_v3 = vld [vmem:[%s282_s7 + $0x4] sm:$0x3]  ;;  %s781_s11 = scalar_lea.vmem %s871_s3, %s644_s8  ;;  %s786_s14 = scalar_lea.vmem %s872_s4, %s644_s8 }
  0x11   : > { %v327_v5 = vmax.f32 %v314_v1, %v647_v2  ;;  %311 = vst [vmem:[%s781_s11] sm:$0x7] %v715_v0  ;;  %s792_s17 = scalar_lea.vmem %s873_s5, %s644_s8  ;;  %v796_v7 = vsub.f32 1.0, %v651_v4  ;;  %v799_v8 = vld [vmem:[%s290_s26 + $0x2] sm:$0x3]  ;;  %v805_v10 = vld [vmem:[%s290_s26 + $0x4] sm:$0x3]  ;;  %v344_v52 = vmul.f32 %v794_v6, %v314_v1 }
  0x12   : > { %312 = vst [vmem:[%s786_s14] sm:$0x7] %v715_v0  ;;  %v345_v53 = vmul.f32 %v799_v8, %v647_v2  ;;  %v347_v55 = vmul.f32 %v805_v10, %v776_v3 }
  0x13   : > { %v802_v9 = vmax.f32 %v327_v5, %v776_v3  ;;  %313 = vst [vmem:[%s792_s17] sm:$0x7] %v715_v0  ;;  %v366_v11 = vmul.f32 %v796_v7, %v794_v6  ;;  %v399_v12 = vmul.f32 %v799_v8, %v796_v7  ;;  %v432_v13 = vmul.f32 %v805_v10, %v796_v7 }
  0x14   : > { %v346_v54 = vadd.f32 %v345_v53, %v344_v52 }
  0x15   : > { %v329_v14 = vsub.f32 %v314_v1, %v802_v9  ;;  %v332_v15 = vsub.f32 %v647_v2, %v802_v9  ;;  %v335_v16 = vsub.f32 %v776_v3, %v802_v9  ;;  %v389_v17 = vsel %vm355_vm0, %v366_v11, 0.0 }
  0x16   : > { %v422_v18 = vsel %vm355_vm0, %v399_v12, 0.0  ;;  %v455_v19 = vsel %vm355_vm0, %v432_v13, 0.0  ;;  %v390_v23 = vrot.slane %v389_v17, 4  ;;  %v348_v61 = vadd.f32 %v347_v55, %v346_v54 }
  0x17   : > { %v330_v20 = vmul.f32 1.442695, %v329_v14  ;;  %v333_v21 = vmul.f32 1.442695, %v332_v15  ;;  %v336_v22 = vmul.f32 1.442695, %v335_v16 }
  0x18   : > { %v423_v24 = vrot.slane %v422_v18, 4  ;;  %v456_v25 = vrot.slane %v455_v19, 4  ;;  %v391_v26 = vadd.f32 %v390_v23, %v389_v17 }
  0x19   : > { %681 = vpow2.f32 %v330_v20 }
  0x1a   : > { %683 = vpow2.f32 %v333_v21  ;;  %v424_v27 = vadd.f32 %v423_v24, %v422_v18  ;;  %v457_v28 = vadd.f32 %v456_v25, %v455_v19  ;;  %v392_v29 = vrot.slane %v391_v26, 2  ;;  %v388_v42 = vld [vmem:[%s792_s17] sm:$0x1]  ;;  %v421_v44 = vld [vmem:[%s792_s17 + $0x1] sm:$0x1] }
  0x1b   : > { %685 = vpow2.f32 %v336_v22  ;;  %v454_v48 = vld [vmem:[%s792_s17 + $0x2] sm:$0x1] }
  0x1c   : > { %v425_v30 = vrot.slane %v424_v27, 2  ;;  %v458_v31 = vrot.slane %v457_v28, 2  ;;  %v393_v32 = vadd.f32 %v392_v29, %v391_v26 }
  0x1e   : > { %v426_v33 = vadd.f32 %v425_v30, %v424_v27  ;;  %v459_v34 = vadd.f32 %v458_v31, %v457_v28  ;;  %v394_v37 = vrot.slane %v393_v32, 1 }
  0x1f   : > { %v682_v35 = vpop.eup %681 }
  0x20   : > { %v684_v36 = vpop.eup %683  ;;  %v427_v38 = vrot.slane %v426_v33, 1  ;;  %v460_v39 = vrot.slane %v459_v34, 1  ;;  %v395_v43 = vadd.f32 %v394_v37, %v393_v32 }
  0x21   : > { %v686_v40 = vpop.eup %685  ;;  %v338_v41 = vadd.f32 %v684_v36, %v682_v35 }
  0x22   : > { %v428_v45 = vadd.f32 %v427_v38, %v426_v33  ;;  %v461_v46 = vadd.f32 %v460_v39, %v459_v34  ;;  %v396_v49 = vadd.f32 %v395_v43, %v388_v42 }
  0x23   : > { %v339_v47 = vadd.f32 %v686_v40, %v338_v41 }
  0x24   : > { %v429_v50 = vadd.f32 %v428_v45, %v421_v44  ;;  %v462_v51 = vadd.f32 %v461_v46, %v454_v48  ;;  %397 = vst [vmem:[%s792_s17] sm:$0x1] %v396_v49  ;;  %v367_v49 = vld [vmem:[%s781_s11] sm:$0x1] }
  0x25   : > { %687 = vrcp.f32 %v339_v47 }
  0x26   : > { %689 = vlog2.f32 %v339_v47  ;;  %430 = vst [vmem:[%s792_s17 + $0x1] sm:$0x1] %v429_v50  ;;  %v411_v47 = vld [vmem:[%s786_s14 + $0x1] sm:$0x1] }
  0x27   : > { %463 = vst [vmem:[%s792_s17 + $0x2] sm:$0x1] %v462_v51  ;;  %v400_v50 = vld [vmem:[%s781_s11 + $0x1] sm:$0x1] }
  0x2b   : > { %v688_v56 = vpop.eup %687 }
  0x2c   : > { %v690_v57 = vpop.eup %689  ;;  %v341_v58 = vmul.f32 %v688_v56, %v682_v35  ;;  %v342_v59 = vmul.f32 %v688_v56, %v684_v36  ;;  %v343_v60 = vmul.f32 %v688_v56, %v686_v40  ;;  %v378_v40 = vld [vmem:[%s786_s14] sm:$0x1] }
  0x2d   : > { %v350_v62 = vmul.f32 0.6931472, %v690_v57  ;;  %v444_v57 = vld [vmem:[%s786_s14 + $0x2] sm:$0x1] }
  0x2e   : > { %v365_v63 = vmul.f32 %v341_v58, %v796_v7  ;;  %v398_v0 = vmul.f32 %v342_v59, %v796_v7  ;;  %v431_v1 = vmul.f32 %v343_v60, %v796_v7 }
  0x2f   : > { %v351_v2 = vadd.f32 %v350_v62, %v802_v9  ;;  %v353_v62 = vld [vmem:[%s770_s29] sm:$0x1] }
  0x30   : > { %v368_v4 = vmul.f32 %v365_v63, %v794_v6  ;;  %v379_v5 = vsel %vm355_vm0, %v365_v63, 0.0  ;;  %v401_v3 = vmul.f32 %v799_v8, %v398_v0  ;;  %v412_v11 = vsel %vm355_vm0, %v398_v0, 0.0 }
  0x31   : > { %v352_v12 = vsub.f32 %v351_v2, %v348_v61  ;;  %v380_v13 = vrot.slane %v379_v5, 4  ;;  %v413_v14 = vrot.slane %v412_v11, 4  ;;  %v434_v15 = vmul.f32 %v805_v10, %v431_v1 }
  0x32   : > { %v369_v16 = vsel %vm355_vm0, %v368_v4, 0.0  ;;  %v402_v17 = vsel %vm355_vm0, %v401_v3, 0.0  ;;  %v445_v18 = vsel %vm355_vm0, %v431_v1, 0.0  ;;  %v433_v1 = vld [vmem:[%s781_s11 + $0x2] sm:$0x1] }
  0x33   : > { %v354_v9 = vmul.f32 %v352_v12, %v796_v7  ;;  %v370_v6 = vrot.slane %v369_v16, 4  ;;  %v381_v19 = vadd.f32 %v380_v13, %v379_v5  ;;  %v403_v20 = vrot.slane %v402_v17, 4 }
  0x34   : > { %v414_v21 = vadd.f32 %v413_v14, %v412_v11  ;;  %v435_v8 = vsel %vm355_vm0, %v434_v15, 0.0  ;;  %v446_v22 = vrot.slane %v445_v18, 4 }
  0x35   : > { %v356_v23 = vsel %vm355_vm0, %v354_v9, 0.0  ;;  %v371_v24 = vadd.f32 %v370_v6, %v369_v16  ;;  %v382_v25 = vrot.slane %v381_v19, 2  ;;  %v404_v10 = vadd.f32 %v403_v20, %v402_v17 }
  0x36   : > { %v357_v26 = vrot.slane %v356_v23, 4  ;;  %v415_v27 = vrot.slane %v414_v21, 2  ;;  %v436_v28 = vrot.slane %v435_v8, 4  ;;  %v447_v29 = vadd.f32 %v446_v22, %v445_v18 }
  0x37   : > { %v372_v30 = vrot.slane %v371_v24, 2  ;;  %v383_v31 = vadd.f32 %v382_v25, %v381_v19  ;;  %v405_v7 = vrot.slane %v404_v10, 2 }
  0x38   : > { %v358_v32 = vadd.f32 %v357_v26, %v356_v23  ;;  %v416_v33 = vadd.f32 %v415_v27, %v414_v21  ;;  %v437_v34 = vadd.f32 %v436_v28, %v435_v8  ;;  %v448_v35 = vrot.slane %v447_v29, 2 }
  0x39   : > { %v373_v36 = vadd.f32 %v372_v30, %v371_v24  ;;  %v384_v37 = vrot.slane %v383_v31, 1  ;;  %v406_v38 = vadd.f32 %v405_v7, %v404_v10 }
  0x3a   : > { %v359_v39 = vrot.slane %v358_v32, 2  ;;  %v417_v41 = vrot.slane %v416_v33, 1  ;;  %v438_v42 = vrot.slane %v437_v34, 2  ;;  %v449_v43 = vadd.f32 %v448_v35, %v447_v29 }
  0x3b   : > { %v374_v44 = vrot.slane %v373_v36, 1  ;;  %v385_v45 = vadd.f32 %v384_v37, %v383_v31  ;;  %v407_v46 = vrot.slane %v406_v38, 1 }
  0x3c   : > { %v360_v48 = vadd.f32 %v359_v39, %v358_v32  ;;  %v418_v51 = vadd.f32 %v417_v41, %v416_v33  ;;  %v439_v52 = vadd.f32 %v438_v42, %v437_v34  ;;  %v450_v53 = vrot.slane %v449_v43, 1 }
  0x3d   : > { %v375_v54 = vadd.f32 %v374_v44, %v373_v36  ;;  %v386_v55 = vadd.f32 %v385_v45, %v378_v40  ;;  %v408_v56 = vadd.f32 %v407_v46, %v406_v38 }
  0x3e   : > { %v361_v58 = vrot.slane %v360_v48, 1  ;;  %v419_v59 = vadd.f32 %v418_v51, %v411_v47  ;;  %v440_v60 = vrot.slane %v439_v52, 1  ;;  %v451_v61 = vadd.f32 %v450_v53, %v449_v43 }
  0x3f   : > { %v376_v63 = vadd.f32 %v375_v54, %v367_v49  ;;  %387 = vst [vmem:[%s786_s14] sm:$0x1] %v386_v55  ;;  %v409_v0 = vadd.f32 %v408_v56, %v400_v50 }
  0x40   : > { %v362_v2 = vadd.f32 %v361_v58, %v360_v48  ;;  %420 = vst [vmem:[%s786_s14 + $0x1] sm:$0x1] %v419_v59  ;;  %v441_v4 = vadd.f32 %v440_v60, %v439_v52  ;;  %v452_v5 = vadd.f32 %v451_v61, %v444_v57 }
  0x41   : > { %377 = vst [vmem:[%s781_s11] sm:$0x1] %v376_v63 }
  0x42   : > { %v363_v3 = vadd.f32 %v362_v2, %v353_v62  ;;  %410 = vst [vmem:[%s781_s11 + $0x1] sm:$0x1] %v409_v0  ;;  %v442_v11 = vadd.f32 %v441_v4, %v433_v1 }
  0x43   : > { %453 = vst [vmem:[%s786_s14 + $0x2] sm:$0x1] %v452_v5 }
  0x44   : > { %364 = vst [vmem:[%s770_s29] sm:$0x1] %v363_v3 }
  0x45   : > { %443 = vst [vmem:[%s781_s11 + $0x2] sm:$0x1] %v442_v11 }
  0x46 PF: > { %s16_s20 = sadd.s32 1, %s713_s20   ;;  %s874_s18 = smov %s709_s19 }
  0x47   : > { %p13_p5 = scmp.ge.s32.totalorder %s16_s20, 4   ;;  %s875_s19 = smov %s877_s21 }
  0x49   :  { %15 = sbr.rel (!%p13_p5) target bundleno = 2 (0x2), region = 106 }

</bundles_post_ra>
